<compile_context>
chip_gen: v5e
topology: v5e:2x2
jax: 0.10.0
libtpu: 0.0.40
codegen_flags: <defaults>
</compile_context>

<pallas_src>
import functools
import math

import jax
import jax.numpy as jnp
import numpy as np
from jax import lax
from jax.experimental import pallas as pl
from jax.experimental.pallas import tpu as pltpu

_K = 128                         # time-block size = native MXU tile on every TPU gen
_BLOCK_BYTES = 2 * 1024 * 1024   # target bytes per pipeline buffer (f32)


def _round_up(a, b):
    return ((a + b - 1) // b) * b


def _highpass_biquad_coeffs(sample_rate, cutoff_freq, Q):
    """Same formulas as torchaudio.functional.highpass_biquad, normalized by a0."""
    w0 = 2.0 * math.pi * cutoff_freq / sample_rate
    alpha = math.sin(w0) / (2.0 * Q)
    cos_w0 = math.cos(w0)
    b0 = (1.0 + cos_w0) / 2.0
    b1 = -(1.0 + cos_w0)
    b2 = (1.0 + cos_w0) / 2.0
    a0 = 1.0 + alpha
    a1 = -2.0 * cos_w0
    a2 = 1.0 - alpha
    return (b0 / a0, b1 / a0, b2 / a0, a1 / a0, a2 / a0)


@functools.lru_cache(maxsize=None)
def _block_filter_constants(sample_rate, cutoff_freq, Q, K):
    """Float64 host precompute of all block-recursion constants.

    Returns:
      gt  : (K, K) f32, gt[j, t] = g[t - j]  (zero-state Toeplitz; y_zs = x @ gt)
      aux : (8, K) f32, rows = [obs0, obs1, w0, w1, 0...]
              obs[t] = C A^t            (boundary -> output)
              w[j]   = A^(K-1-j) B      (input -> next state)
      ak  : tuple of 4 python floats = A^K entries (row-major).
    """
    b0, b1, b2, a1, a2 = _highpass_biquad_coeffs(sample_rate, cutoff_freq, Q)
    D = b0
    beta1 = b1 - a1 * b0
    beta2 = b2 - a2 * b0

    disc = a2 - 0.25 * a1 * a1
    if disc > 0.0:
        # Complex poles (the default Q=0.707 case): balanced coupled (rotation) form.
        rc = -0.5 * a1
        rs = math.sqrt(disc)
        A = np.array([[rc, -rs], [rs, rc]], np.float64)
        B_unb = np.array([1.0, 0.0], np.float64)
        C_unb = np.array([beta1, (beta2 + beta1 * rc) / rs], np.float64)
    else:
        # Real poles: quasi-triangular form (still well conditioned, |p| < 1).
        p1 = -0.5 * a1 + math.sqrt(-disc)
        p2 = -0.5 * a1 - math.sqrt(-disc)
        A = np.array([[p1, 1.0], [0.0, p2]], np.float64)
        B_unb = np.array([0.0, 1.0], np.float64)
        C_unb = np.array([beta2 + beta1 * p1, beta1], np.float64)

    gamma = math.sqrt(float(np.linalg.norm(C_unb)) / max(float(np.linalg.norm(B_unb)), 1e-30))
    B = B_unb * gamma
    C = C_unb / gamma

    # Impulse response g[0]=D, g[k]=C A^(k-1) B.
    g = np.zeros(K, np.float64)
    g[0] = D
    CA = C.copy()
    for k in range(1, K):
        g[k] = CA @ B
        CA = CA @ A

    gt = np.zeros((K, K), np.float64)
    for j in range(K):
        gt[j, j:] = g[: K - j]

    obs = np.zeros((K, 2), np.float64)      # obs[t] = C A^t
    CA = C.copy()
    for t in range(K):
        obs[t] = CA
        CA = CA @ A

    w = np.zeros((K, 2), np.float64)        # w[j] = A^(K-1-j) B
    AB = B.copy()
    for j in range(K - 1, -1, -1):
        w[j] = AB
        AB = A @ AB

    AK = np.linalg.matrix_power(A, K)

    aux = np.zeros((8, K), np.float64)
    aux[0] = obs[:, 0]
    aux[1] = obs[:, 1]
    aux[2] = w[:, 0]
    aux[3] = w[:, 1]

    ak = (float(AK[0, 0]), float(AK[0, 1]), float(AK[1, 0]), float(AK[1, 1]))
    return np.asarray(gt, np.float32), np.asarray(aux, np.float32), ak


def _make_kernel(nblk: int, K: int, ak):
    ak00, ak01, ak10, ak11 = ak

    def kernel(gt_ref, aux_ref, x_ref, o_ref, state_ref):
        # state columns: balanced coupled-form state (s0, s1) at block entry.
        @pl.when(pl.program_id(1) == 0)
        def _():
            state_ref[...] = jnp.zeros_like(state_ref)

        def body(blk, carry):
            s0, s1 = carry                                    # (n_tile, 1) each
            base = pl.multiple_of(blk * K, K)
            xa = jnp.abs(x_ref[:, pl.ds(base, K)])            # rectification fused
            # Zero-state block response: one MXU matmul per 128 samples.
            yb = jnp.dot(xa, gt_ref[...], preferred_element_type=jnp.float32)
            # Zero-input (boundary) response: two rank-1 terms, all coefficients O(0.06).
            yb = yb + s0 * aux_ref[0:1, :] + s1 * aux_ref[1:2, :]
            # torchaudio.lfilter clamps only the *stored output*; the recursion state
            # stays unclamped.
            o_ref[:, pl.ds(base, K)] = jnp.clip(yb, -1.0, 1.0)
            # State handoff: s_new = A^K s + sum_j A^(K-1-j) B |x|[j]   (well conditioned).
            s0n = (jnp.sum(xa * aux_ref[2:3, :], axis=-1, keepdims=True)
                   + ak00 * s0 + ak01 * s1)
            s1n = (jnp.sum(xa * aux_ref[3:4, :], axis=-1, keepdims=True)
                   + ak10 * s0 + ak11 * s1)
            return (s0n, s1n)

        carry = (state_ref[:, 0:1], state_ref[:, 1:2])
        s0, s1 = lax.fori_loop(0, nblk, body, carry)
        # Persist state across time tiles of the current channel tile.
        state_ref[:, 0:1] = s0
        state_ref[:, 1:2] = s1

    return kernel


@functools.partial(
    jax.jit,
    static_argnames=("sample_rate", "cutoff_freq", "Q", "t_tile_max", "n_tile_max"),
)
def envelope_extractor(x, sample_rate=24000, cutoff_freq=10.0, Q=0.707,
                       t_tile_max=32768, n_tile_max=128):
    """JAX/Pallas equivalent of EnvelopeExtractor.forward (abs -> highpass biquad)."""
    x = jnp.asarray(x, jnp.float32)
    orig_shape = x.shape
    T = orig_shape[-1]
    x2 = x.reshape(-1, T)                      # (N, T): channels on sublanes
    N = x2.shape[0]
    K = _K

    # ---- tiling (sized to keep the double-buffered pipeline well under VMEM) ----
    n_tile = min(_round_up(N, 8), max(8, (n_tile_max // 8) * 8))
    N_pad = _round_up(N, n_tile)
    t_budget = max(K, ((_BLOCK_BYTES // 4) // n_tile) // K * K)
    t_cap = max(K, (t_tile_max // K) * K)
    T_pad_k = _round_up(T, K)
    t_tile = min(t_budget, t_cap, T_pad_k)
    T_pad = _round_up(T_pad_k, t_tile)

    xp = jnp.pad(x2, ((0, N_pad - N), (0, T_pad - T)))

    gt_np, aux_np, ak = _block_filter_constants(
        float(sample_rate), float(cutoff_freq), float(Q), K)
    gt = jnp.asarray(gt_np)
    aux = jnp.asarray(aux_np)

    grid = (N_pad // n_tile, T_pad // t_tile)
    kernel = _make_kernel(t_tile // K, K, ak)

    out = pl.pallas_call(
        kernel,
        out_shape=jax.ShapeDtypeStruct((N_pad, T_pad), jnp.float32),
        grid=grid,
        in_specs=[
            pl.BlockSpec((K, K), lambda i, j: (0, 0)),            # G^T (constant)
            pl.BlockSpec((8, K), lambda i, j: (0, 0)),            # obs / w rows
            pl.BlockSpec((n_tile, t_tile), lambda i, j: (i, j)),  # signal tile
        ],
        out_specs=pl.BlockSpec((n_tile, t_tile), lambda i, j: (i, j)),
        scratch_shapes=[pltpu.VMEM((n_tile, 2), jnp.float32)],    # persistent IIR state
        input_output_aliases={2: 0},                              # reuse x buffer for y
        compiler_params=pltpu.CompilerParams(
            dimension_semantics=("parallel", "arbitrary"),
            vmem_limit_bytes=32 * 1024 * 1024,
        ),
    )(gt, aux, xp)

    return out[:N, :T].reshape(orig_shape)


def _reference_f64(x, sample_rate=24000, cutoff_freq=10.0, Q=0.707):
    """Float64 numpy sequential reference (ground-truth math of the torch module)."""
    b0, b1, b2, a1, a2 = _highpass_biquad_coeffs(
        float(sample_rate), float(cutoff_freq), float(Q))
    xr = np.abs(np.asarray(x, np.float64))
    orig_shape = xr.shape
    T = orig_shape[-1]
    xr = xr.reshape(-1, T)
    N = xr.shape[0]
    y = np.zeros_like(xr)
    x1 = np.zeros(N); x2 = np.zeros(N); y1 = np.zeros(N); y2 = np.zeros(N)
    for t in range(T):
        xt = xr[:, t]
        yt = b0 * xt + b1 * x1 + b2 * x2 - a1 * y1 - a2 * y2
        y[:, t] = yt
        x2, x1 = x1, xt
        y2, y1 = y1, yt
    return np.clip(y, -1.0, 1.0).reshape(orig_shape)


if __name__ == "__main__":
    key = jax.random.PRNGKey(0)
    B, C, T = 2, 4, 600                       # small, non-multiple-of-128 time length
    x = jax.random.normal(key, (B, C, T), dtype=jnp.float32) * 0.5

    y_ref = _reference_f64(np.asarray(x))

    # Default tiling (single time tile for this small T).
    y = jax.block_until_ready(envelope_extractor(x))
    assert y.shape == x.shape
    np.testing.assert_allclose(np.asarray(y), y_ref, rtol=1e-3, atol=5e-4)

    # Force several time tiles to exercise the cross-tile IIR state carry + padding.
    y_tiled = jax.block_until_ready(envelope_extractor(x, t_tile_max=256))
    np.testing.assert_allclose(np.asarray(y_tiled), y_ref, rtol=1e-3, atol=5e-4)

    print("KERNEL_OK")
</pallas_src>

<mosaic_0001>
module attributes {stable_mosaic.version = 11 : i64} {
  func.func @kernel(%arg0: i32, %arg1: i32, %arg2: memref<128x128xf32, #tpu.memory_space<vmem>>, %arg3: memref<8x128xf32, #tpu.memory_space<vmem>>, %arg4: memref<8x640xf32, #tpu.memory_space<vmem>>, %arg5: memref<8x640xf32, #tpu.memory_space<vmem>>, %arg6: memref<8x2xf32, #tpu.memory_space<vmem>>) attributes {dimension_semantics = [#tpu.dimension_semantics<parallel>, #tpu.dimension_semantics<arbitrary>], iteration_bounds = array<i64: 1, 1>, scalar_prefetch = 0 : i64, scratch_operands = 1 : i64, tpu.core_type = #tpu.core_type<tc>, window_params = [{pipeline_mode = #tpu.pipeline_mode<synchronous>, transform_indices = @transform_0, window_bounds = array<i64: 128, 128>}, {pipeline_mode = #tpu.pipeline_mode<synchronous>, transform_indices = @transform_1, window_bounds = array<i64: 8, 128>}, {transform_indices = @transform_2, window_bounds = array<i64: 8, 640>}, {transform_indices = @transform_3, window_bounds = array<i64: 8, 640>}]} {
    %c0_i32 = arith.constant 0 : i32
    %0 = arith.cmpi eq, %arg1, %c0_i32 : i32
    %1 = arith.extui %0 : i1 to i32
    %c0_i32_0 = arith.constant 0 : i32
    %2 = arith.cmpi ne, %1, %c0_i32_0 : i32
    scf.if %2 {
      %cst = arith.constant 0.000000e+00 : f32
      %9 = vector.broadcast %cst : f32 to vector<8x2xf32>
      %c0_9 = arith.constant 0 : index
      %c0_10 = arith.constant 0 : index
      %10 = vector.load %arg6[%c0_9, %c0_10] : memref<8x2xf32, #tpu.memory_space<vmem>>, vector<8x2xf32>
      tpu.vector_store %arg6[%c0_9, %c0_10], %9 {strides = array<i32>} : memref<8x2xf32, #tpu.memory_space<vmem>>, vector<8x2xf32>,
    } else {
    }
    %c0 = arith.constant 0 : index
    %c0_1 = arith.constant 0 : index
    %3 = vector.load %arg6[%c0, %c0_1] : memref<8x2xf32, #tpu.memory_space<vmem>>, vector<8x1xf32>
    %c0_2 = arith.constant 0 : index
    %c1 = arith.constant 1 : index
    %4 = vector.load %arg6[%c0_2, %c1] : memref<8x2xf32, #tpu.memory_space<vmem>>, vector<8x1xf32>
    %c0_i32_3 = arith.constant 0 : i32
    %c5_i32 = arith.constant 5 : i32
    %5 = arith.addi %c0_i32_3, %c5_i32 : i32
    %c1_i32 = arith.constant 1 : i32
    %6:2 = scf.for %arg7 = %c0_i32_3 to %5 step %c1_i32 iter_args(%arg8 = %3, %arg9 = %4) -> (vector<8x1xf32>, vector<8x1xf32>)  : i32 {
      %c128_i32 = arith.constant 128 : i32
      %9 = arith.muli %arg7, %c128_i32 : i32
      %10 = tpu.assume_multiple %9, 128 : i32
      %c0_9 = arith.constant 0 : index
      %11 = arith.index_cast %10 : i32 to index
      %12 = vector.load %arg4[%c0_9, %11] : memref<8x640xf32, #tpu.memory_space<vmem>>, vector<8x128xf32>
      %13 = math.absf %12 : vector<8x128xf32>
      %c0_10 = arith.constant 0 : index
      %c0_11 = arith.constant 0 : index
      %14 = vector.load %arg2[%c0_10, %c0_11] : memref<128x128xf32, #tpu.memory_space<vmem>>, vector<128x128xf32>
      %cst = arith.constant dense<0.000000e+00> : vector<8x128xf32>
      %15 = tpu.matmul %13, %14, %cst {dimension_numbers = #tpu.dot_dimension_numbers<[1], [0], [0], [1], [0, 0, 1, 1], [], []>} : vector<8x128xf32>, vector<128x128xf32>, vector<8x128xf32> -> vector<8x128xf32>
      %c0_12 = arith.constant 0 : index
      %c0_13 = arith.constant 0 : index
      %16 = vector.load %arg3[%c0_12, %c0_13] : memref<8x128xf32, #tpu.memory_space<vmem>>, vector<1x128xf32>
      %17 = vector.broadcast %arg8 : vector<8x1xf32> to vector<8x128xf32>
      %18 = vector.broadcast %16 : vector<1x128xf32> to vector<8x128xf32>
      %19 = arith.mulf %17, %18 : vector<8x128xf32>
      %20 = arith.addf %15, %19 : vector<8x128xf32>
      %c1_14 = arith.constant 1 : index
      %c0_15 = arith.constant 0 : index
      %21 = vector.load %arg3[%c1_14, %c0_15] : memref<8x128xf32, #tpu.memory_space<vmem>>, vector<1x128xf32>
      %22 = vector.broadcast %arg9 : vector<8x1xf32> to vector<8x128xf32>
      %23 = vector.broadcast %21 : vector<1x128xf32> to vector<8x128xf32>
      %24 = arith.mulf %22, %23 : vector<8x128xf32>
      %25 = arith.addf %20, %24 : vector<8x128xf32>
      %cst_16 = arith.constant -1.000000e+00 : f32
      %cst_17 = arith.constant 1.000000e+00 : f32
      %26 = vector.broadcast %cst_16 : f32 to vector<8x128xf32>
      %27 = arith.maximumf %26, %25 : vector<8x128xf32>
      %28 = vector.broadcast %cst_17 : f32 to vector<8x128xf32>
      %29 = arith.minimumf %28, %27 : vector<8x128xf32>
      %c0_18 = arith.constant 0 : index
      %30 = arith.index_cast %10 : i32 to index
      %31 = vector.load %arg5[%c0_18, %30] : memref<8x640xf32, #tpu.memory_space<vmem>>, vector<8x128xf32>
      tpu.vector_store %arg5[%c0_18, %30], %29 {strides = array<i32>} : memref<8x640xf32, #tpu.memory_space<vmem>>, vector<8x128xf32>,
      %c2 = arith.constant 2 : index
      %c0_19 = arith.constant 0 : index
      %32 = vector.load %arg3[%c2, %c0_19] : memref<8x128xf32, #tpu.memory_space<vmem>>, vector<1x128xf32>
      %33 = vector.broadcast %32 : vector<1x128xf32> to vector<8x128xf32>
      %34 = arith.mulf %13, %33 : vector<8x128xf32>
      %cst_20 = arith.constant dense<0.000000e+00> : vector<8xf32>
      %35 = vector.multi_reduction <add>, %34, %cst_20 [1] : vector<8x128xf32> to vector<8xf32>
      %36 = vector.shape_cast %35 : vector<8xf32> to vector<8x1xf32>
      %cst_21 = arith.constant 0.766959547 : f32
      %37 = vector.broadcast %cst_21 : f32 to vector<8x1xf32>
      %38 = arith.mulf %37, %arg8 : vector<8x1xf32>
      %39 = arith.addf %36, %38 : vector<8x1xf32>
      %cst_22 = arith.constant -0.185184553 : f32
      %40 = vector.broadcast %cst_22 : f32 to vector<8x1xf32>
      %41 = arith.mulf %40, %arg9 : vector<8x1xf32>
      %42 = arith.addf %39, %41 : vector<8x1xf32>
      %c3 = arith.constant 3 : index
      %c0_23 = arith.constant 0 : index
      %43 = vector.load %arg3[%c3, %c0_23] : memref<8x128xf32, #tpu.memory_space<vmem>>, vector<1x128xf32>
      %44 = vector.broadcast %43 : vector<1x128xf32> to vector<8x128xf32>
      %45 = arith.mulf %13, %44 : vector<8x128xf32>
      %cst_24 = arith.constant dense<0.000000e+00> : vector<8xf32>
      %46 = vector.multi_reduction <add>, %45, %cst_24 [1] : vector<8x128xf32> to vector<8xf32>
      %47 = vector.shape_cast %46 : vector<8xf32> to vector<8x1xf32>
      %cst_25 = arith.constant 0.185184553 : f32
      %48 = vector.broadcast %cst_25 : f32 to vector<8x1xf32>
      %49 = arith.mulf %48, %arg8 : vector<8x1xf32>
      %50 = arith.addf %47, %49 : vector<8x1xf32>
      %cst_26 = arith.constant 0.766959547 : f32
      %51 = vector.broadcast %cst_26 : f32 to vector<8x1xf32>
      %52 = arith.mulf %51, %arg9 : vector<8x1xf32>
      %53 = arith.addf %50, %52 : vector<8x1xf32>
      scf.yield %42, %53 : vector<8x1xf32>, vector<8x1xf32>
    }
    %c5_i32_4 = arith.constant 5 : i32
    %c0_5 = arith.constant 0 : index
    %c0_6 = arith.constant 0 : index
    %7 = vector.load %arg6[%c0_5, %c0_6] : memref<8x2xf32, #tpu.memory_space<vmem>>, vector<8x1xf32>
    tpu.vector_store %arg6[%c0_5, %c0_6], %6#0 {strides = array<i32>} : memref<8x2xf32, #tpu.memory_space<vmem>>, vector<8x1xf32>,
    %c0_7 = arith.constant 0 : index
    %c1_8 = arith.constant 1 : index
    %8 = vector.load %arg6[%c0_7, %c1_8] : memref<8x2xf32, #tpu.memory_space<vmem>>, vector<8x1xf32>
    tpu.vector_store %arg6[%c0_7, %c1_8], %6#1 {strides = array<i32>} : memref<8x2xf32, #tpu.memory_space<vmem>>, vector<8x1xf32>,
    return
  }
  func.func @transform_0(%arg0: i32, %arg1: i32) -> (i32, i32) {
    %c0_i32 = arith.constant 0 : i32
    %c0_i32_0 = arith.constant 0 : i32
    %c0_i32_1 = arith.constant 0 : i32
    return %c0_i32, %c0_i32_0 : i32, i32
  }
  func.func @transform_1(%arg0: i32, %arg1: i32) -> (i32, i32) {
    %c0_i32 = arith.constant 0 : i32
    %c0_i32_0 = arith.constant 0 : i32
    %c0_i32_1 = arith.constant 0 : i32
    return %c0_i32, %c0_i32_0 : i32, i32
  }
  func.func @transform_2(%arg0: i32, %arg1: i32) -> (i32, i32) {
    %c0_i32 = arith.constant 0 : i32
    return %arg0, %arg1 : i32, i32
  }
  func.func @transform_3(%arg0: i32, %arg1: i32) -> (i32, i32) {
    %c0_i32 = arith.constant 0 : i32
    return %arg0, %arg1 : i32, i32
  }
}

</mosaic_0001>

<bundles_post_ra>
// kernel: envelope_extractor.1
= control target key start
LH: loop header
LB: loop body
LE: loop exit
PB: predicated region body
PF: predicated region fallthrough
CT: control target
= control target key end

     0   :  { %vm18_vm0 = vcmask 15360   ;;  %v204_v0 = vmov 0.0   ;;  %s205_s12 = smov 127   ;;  %s232_s13 = smov 0   ;;  %s320_s0 = inlined_call_operand.vmem [shape: f32[128,128], index: 0, kind: input, shape index: {}]   ;;  %s321_s1 = inlined_call_operand.vmem [shape: f32[8,128], index: 1, kind: input, shape index: {}]   ;;  %s322_s2 = inlined_call_operand.vmem [shape: f32[8,640], index: 2, kind: input, shape index: {}, may-alias: {2,3}]   ;;  %s323_s3 = inlined_call_operand.vmem [shape: f32[8,640], index: 3, kind: output, shape index: {}, may-alias: {2,3}]  }
   0x1   :  { %19 = vst.msk [vmem:[#allocation2] sm:$0xff] %vm18_vm0, %v204_v0 }
   0x8   :  { %v20_v1 = vld [vmem:[#allocation2] sm:$0xff]  }
   0x9   :  { %22 = vrot.lane.b32.xlu0 %v20_v1, %s205_s12 }
  0x7b   :  { %v23_v2 = vpop.permute.xlu0 %22  }
  0x7c LB: > { %v55_v3 = vld [vmem:[%s320_s0 + $0x78] sm:$0xff]  ;;  %v54_v4 = vld [vmem:[%s320_s0 + $0x70] sm:$0xff]  ;;  %v206_v5 = vmov 0   ;;  %v53_v6 = vld [vmem:[%s320_s0 + $0x68] sm:$0xff]  ;;  %s143_s20 = sshll.u32 %s202_s13, 7  ;;  %s30_s13 = sadd.s32 1, %s202_s13   ;;  %s202_s13 = sphi %s232_s13, %s30_s13   ;;  %v198_v1 = vphi %v20_v1, %v325_v1   ;;  %v194_v2 = vphi %v23_v2, %v324_v2  }
  0x7d   : > { %64 = vmatpush.msra.mxu0 %v55_v3  ;;  %175 = vset.pattern.permute.xlu0 %v206_v5  ;;  %s249_s21 = sshra.s32 %s143_s20, 7  ;;  %v52_v7 = vld [vmem:[%s320_s0 + $0x60] sm:$0xff]  ;;  %v51_v9 = vld [vmem:[%s320_s0 + $0x58] sm:$0xff]  ;;  %v50_v12 = vld [vmem:[%s320_s0 + $0x50] sm:$0xff]  ;;  %v103_v26 = vmul.f32 0.76695955, %v198_v1 }
  0x7e   : > { %59 = vperm.xlu0 %175, %v198_v1   ;;  %s144_s24 = sshll.u32 %s249_s21, 3  ;;  %v176_v8 = vld [vmem:[%s321_s1 + $0x2] ss:$0 sm:$0xff]  ;;  %v49_v14 = vld [vmem:[%s320_s0 + $0x48] sm:$0xff]  ;;  %v177_v15 = vld [vmem:[%s321_s1 + $0x3] ss:$0 sm:$0xff] }
  0x7f   : > { %65 = vmatpush.msra.mxu0 %v54_v4  ;;  %s37_s27 = scalar_lea.vmem %s322_s2, %s144_s24  ;;  %v48_v16 = vld [vmem:[%s320_s0 + $0x40] sm:$0xff]  ;;  %v47_v17 = vld [vmem:[%s320_s0 + $0x38] sm:$0xff]  ;;  %v46_v19 = vld [vmem:[%s320_s0 + $0x30] sm:$0xff]  ;;  %v105_v27 = vmul.f32 -0.18518455, %v194_v2  ;;  %s96_s11 = scalar_lea.vmem %s323_s3, %s144_s24 }
  0x80   : > { %v38_v10 = vld [vmem:[%s37_s27] sm:$0xff]  ;;  %v45_v20 = vld [vmem:[%s320_s0 + $0x28] sm:$0xff]  ;;  %v43_v22 = vld [vmem:[%s320_s0 + $0x18] sm:$0xff]  ;;  %v112_v31 = vmul.f32 0.18518455, %v198_v1  ;;  %p27_p0 = scmp.ge.s32.totalorder %s30_s13, 5  }
  0x81   : > { %66 = vmatpush.msra.mxu0 %v53_v6  ;;  %v39_v11 = vand.u32 2147483647, %v38_v10  ;;  %v44_v21 = vld [vmem:[%s320_s0 + $0x20] sm:$0xff]  ;;  %v42_v23 = vld [vmem:[%s320_s0 + $0x10] sm:$0xff]  ;;  %v41_v24 = vld [vmem:[%s320_s0 + $0x8] sm:$0xff]  ;;  %vm116_vm1 = vcmask (%p27_p0), 7168  }
  0x82   : > { %v40_v25 = vld [vmem:[%s320_s0] sm:$0xff]  ;;  %v114_v32 = vmul.f32 0.76695955, %v194_v2  ;;  %s207_s12 = smov (%p27_p0), 1   ;;  %vm122_vm2 = vcmask (%p27_p0), 15368  }
  0x83   : > { %67 = vmatpush.msra.mxu0 %v52_v7  ;;  %v100_v13 = vmul.f32 %v176_v8, %v39_v11  ;;  %v109_v18 = vmul.f32 %v177_v15, %v39_v11  ;;  %v178_v37 = vld [vmem:[%s321_s1] ss:$0 sm:$0xff]  ;;  %v179_v38 = vld [vmem:[%s321_s1 + $0x1] ss:$0 sm:$0xff] }
  0x85   : > { %68 = vmatpush.msra.mxu0 %v51_v9  ;;  %101 = vadd.xlane.f32.xlu1 %v100_v13 }
  0x86   : > { %87 = vperm.xlu0 %175, %v194_v2  }
  0x87   : > { %69 = vmatpush.msra.mxu0 %v50_v12 }
  0x89   : > { %70 = vmatpush.msra.mxu0 %v49_v14 }
  0x8b   : > { %71 = vmatpush.msra.mxu0 %v48_v16 }
  0x8d   : > { %72 = vmatpush.msra.mxu0 %v47_v17  ;;  %110 = vadd.xlane.f32.xlu1 %v109_v18 }
  0x8f   : > { %73 = vmatpush.msra.mxu0 %v46_v19 }
  0x91   : > { %74 = vmatpush.msra.mxu0 %v45_v20 }
  0x93   : > { %75 = vmatpush.msra.mxu0 %v44_v21 }
  0x95   : > { %76 = vmatpush.msra.mxu0 %v43_v22 }
  0x97   : > { %77 = vmatpush.msra.mxu0 %v42_v23 }
  0x99   : > { %78 = vmatpush.msra.mxu0 %v41_v24 }
  0x9b   : > { %79 = vmatpush.msra.mxu0 %v40_v25 }
  0x9c   : > { %80 = vmatmul.f32.vlgmr.msra.gmra.mxu0 %v39_v11 }
  0xf0   : > { %v60_v36 = vpop.permute.xlu0 %59 }
  0xf1   : > { %v63_v40 = vmul.f32 %v178_v37, %v60_v36 }
  0xf8   : > { %v102_v28 = vpop.xlane.xlu1 %101  ;;  %v88_v39 = vpop.permute.xlu0 %87 }
  0xf9   : > { %v104_v29 = vadd.f32 %v103_v26, %v102_v28  ;;  %v91_v42 = vmul.f32 %v179_v38, %v88_v39 }
  0xfb   : > { %v106_v30 = vadd.f32 %v105_v27, %v104_v29  }
  0xfd   : > { %v325_v1 = vmov %v106_v30  ;;  %117 = vst.msk [vmem:[#allocation2] sm:$0xff] (%p27_p0), %vm116_vm1, %v106_v30 }
 0x100   : > { %v111_v33 = vpop.xlane.xlu1 %110 }
 0x101   : > { %v113_v34 = vadd.f32 %v112_v31, %v111_v33 }
 0x103   : > { %v115_v35 = vadd.f32 %v114_v32, %v113_v34  }
 0x105   : > { %v324_v2 = vmov %v115_v35  ;;  %119 = vrot.lane.b32.xlu0 (%p27_p0), %v115_v35, %s207_s12 }
 0x119   : > { %v81_v41 = vpop.f32.mrf.mxu0 }
 0x11a   : > { %v82_v43 = vadd.f32 %v81_v41, %v63_v40 }
 0x11c   : > { %v92_v44 = vadd.f32 %v91_v42, %v82_v43  ;;  %29 = sbr.rel (!%p27_p0) target bundleno = 124 (0x7c), region = 45 }
 0x11e   : > { %v145_v45 = vclamps-f32 %v92_v44, 1.0 }
 0x120   : > { %97 = vst [vmem:[%s96_s11] sm:$0xff] %v145_v45 }
 0x177   :  { %v120_v46 = vpop.permute.xlu0 %119 }
 0x178   :  { %123 = vst.msk [vmem:[#allocation2] sm:$0xff] %vm122_vm2, %v120_v46 }

</bundles_post_ra>
